<compile_context>
chip_gen: v6e
topology: v6e:2x2x1
jax: 0.10.0
libtpu: 0.0.40
codegen_flags: <defaults>
</compile_context>

<pallas_src>
import functools

import jax
import jax.numpy as jnp
from jax import lax
from jax.experimental import pallas as pl
from jax.experimental.pallas import tpu as pltpu


_LANE_OPTIONS = (1024, 512, 256, 128)


def _cdiv(a, b):
    return -(-a // b)


def _device_info():
    """Returns (num_tensorcores_for_parallel_grid, target_tile_bytes)."""
    try:
        kind = jax.devices()[0].device_kind.lower()
    except Exception:
        return 1, 4 * 1024 * 1024
    if "v7" in kind or "tpu7" in kind:
        return 2, 8 * 1024 * 1024      # 2 TCs/chip; 64 MiB phys / 32 MiB scoped VMEM
    if "v6" in kind:
        return 1, 8 * 1024 * 1024      # 32 MiB scoped VMEM default
    return 1, 4 * 1024 * 1024          # v5e (16 MiB scoped) & conservative default


def _softplus(x):
    # Numerically stable softplus: max(x, 0) + log1p(exp(-|x|))
    return jnp.maximum(x, 0.0) + jnp.log1p(jnp.exp(-jnp.abs(x)))


def _gen_kernel(fake_ref, out_ref):
    fp = fake_ref[...].astype(jnp.float32)
    out_ref[...] = jnp.full(out_ref.shape, jnp.mean(_softplus(-fp)), jnp.float32)


def _disc_kernel(fake_ref, real_ref, grad_ref, out_ref, acc_ref, *,
                 block_rows, chunk_rows, rows_total, steps, needs_mask,
                 penalty, inv_n):
    """Grid = (num_parallel, steps).

    fake_ref/real_ref: (1, N) resident lane-dense score blocks.
    grad_ref:          (block_rows, lanes) tile of the gradient slab.
    acc_ref:           (chunk_rows, lanes) f32 running sum-of-squares scratch.
    out_ref:           (1, 8, 128) partial-loss block for this parallel slice.
    """
    p = pl.program_id(0)
    s = pl.program_id(1)
    lanes = grad_ref.shape[-1]
    n_chunks = block_rows // chunk_rows
    rem_rows = block_rows % chunk_rows

    @pl.when(s == 0)
    def _init():
        acc_ref[...] = jnp.zeros_like(acc_ref)

    def tile_sum(masked):
        # Register-resident (chunk_rows, lanes) accumulator: per input vreg we
        # pay 1 vld + 1 vmul + 1 vadd, no per-element VMEM store.
        def body(i, acc):
            r0 = pl.multiple_of(i * chunk_rows, chunk_rows)
            g = grad_ref[pl.ds(r0, chunk_rows), :].astype(jnp.float32)
            if masked:
                row0 = (p * steps + s) * block_rows + i * chunk_rows
                rid = row0 + lax.broadcasted_iota(jnp.int32, g.shape, 0)
                g = jnp.where(rid < rows_total, g, 0.0)
            return acc + g * g

        init = jnp.zeros((chunk_rows, lanes), jnp.float32)
        if n_chunks == 0:
            return init
        unroll = 8 if n_chunks >= 8 else 1
        return lax.fori_loop(0, n_chunks, body, init, unroll=unroll)

    if needs_mask:
        # Multi-block regime with a ragged last block and/or a phantom block
        # (odd block count split across 2 TCs): mask rows >= rows_total before
        # squaring.  Fully valid blocks take the unmasked fast path.
        block_start = (p * steps + s) * block_rows
        is_full = block_start + block_rows <= rows_total

        @pl.when(is_full)
        def _full():
            acc_ref[...] += tile_sum(masked=False)

        @pl.when(jnp.logical_not(is_full))
        def _partial():
            acc_ref[...] += tile_sum(masked=True)
    else:
        if n_chunks > 0:
            acc_ref[...] += tile_sum(masked=False)
        if rem_rows:
            # Only in the single-block regime (block_rows == rows_total, not a
            # multiple of chunk_rows).
            g = grad_ref[pl.ds(n_chunks * chunk_rows, rem_rows), :]
            g = g.astype(jnp.float32)
            acc_ref[0:rem_rows, :] += g * g

    @pl.when(s == steps - 1)
    def _finalize():
        # mean over batch of per-sample squared L2 norms == sum(g*g) / N
        val = jnp.sum(acc_ref[...]) * (penalty * inv_n)

        @pl.when(p == 0)
        def _with_scores():
            fp = fake_ref[...].astype(jnp.float32)
            rs = real_ref[...].astype(jnp.float32)
            sp_terms = jnp.mean(_softplus(fp)) + jnp.mean(_softplus(-rs))
            out_ref[...] = jnp.full(out_ref.shape, val + sp_terms, jnp.float32)

        @pl.when(p != 0)
        def _without_scores():
            out_ref[...] = jnp.full(out_ref.shape, val, jnp.float32)


def _plan(rows, lanes, itemsize):
    """Choose tile rows / parallelism for the (rows, lanes) gradient slab."""
    num_tc, tile_bytes = _device_info()
    chunk_rows = max(8, 8192 // lanes)  # ~8 f32 vregs per register-resident chunk
    max_rows = max(chunk_rows,
                   (tile_bytes // (lanes * itemsize)) // chunk_rows * chunk_rows)
    if rows <= max_rows:
        return dict(block_rows=rows, num_blocks=1, num_parallel=1, steps=1,
                    chunk_rows=chunk_rows, needs_mask=False)
    block_rows = max_rows
    num_blocks = _cdiv(rows, block_rows)
    num_parallel = min(num_tc, num_blocks)
    steps = _cdiv(num_blocks, num_parallel)
    needs_mask = (num_parallel * steps * block_rows) != rows
    return dict(block_rows=block_rows, num_blocks=num_blocks,
                num_parallel=num_parallel, steps=steps,
                chunk_rows=chunk_rows, needs_mask=needs_mask)


def wgan_gp_r1(fake_predict, mode, real_scores=None, grad_real=None, penalty=5.0):
    """Forward pass of WganGPR1 as Pallas TPU kernels. Returns a scalar loss."""
    fake2d = jnp.reshape(fake_predict, (1, -1))          # lane-dense scores
    full_vmem = pl.BlockSpec(memory_space=pltpu.MemorySpace.VMEM)

    if mode == "generator":
        out = pl.pallas_call(
            _gen_kernel,
            out_shape=jax.ShapeDtypeStruct((1, 1), jnp.float32),
            in_specs=[full_vmem],
            out_specs=full_vmem,
        )(fake2d)
        return out[0, 0]

    if mode != "discriminator":
        raise ValueError(f"unknown mode: {mode}")

    real2d = jnp.reshape(real_scores, (1, -1))
    n_batch = grad_real.shape[0]
    inv_n = 1.0 / float(n_batch)
    penalty = float(penalty)

    grad_flat = jnp.reshape(grad_real, (-1,))            # zero-copy flatten
    total = grad_flat.shape[0]

    # Widest lane count dividing the element count -> the 2-D (rows, lanes)
    # view is a zero-copy reshape (no padding / no full-array HBM copy).
    lanes = next((l for l in _LANE_OPTIONS if total >= l and total % l == 0), 128)
    rows = total // lanes
    tail = total - rows * lanes

    tail_sq = None
    if tail:
        # Ragged sub-row remainder (< lanes elements): tiny wrapper-side sum.
        t = grad_flat[rows * lanes:].astype(jnp.float32)
        tail_sq = jnp.sum(t * t)

    if rows == 0:
        # Entire gradient lives in the ragged tail; feed the kernel a tiny zero
        # slab so it still produces the softplus terms.
        grad2d = jnp.zeros((8, 128), jnp.float32)
        lanes, rows = 128, 8
    elif tail:
        # TODO(synk): this prefix slice materializes a copy of the aligned part
        # of grad_real; only hit when the element count is not a multiple of 128.
        grad2d = jnp.reshape(grad_flat[:rows * lanes], (rows, lanes))
    else:
        grad2d = jnp.reshape(grad_flat, (rows, lanes))   # zero-copy

    plan = _plan(rows, lanes, grad2d.dtype.itemsize)
    block_rows = plan["block_rows"]
    num_blocks = plan["num_blocks"]
    num_parallel = plan["num_parallel"]
    steps = plan["steps"]

    kernel = functools.partial(
        _disc_kernel,
        block_rows=block_rows, chunk_rows=plan["chunk_rows"], rows_total=rows,
        steps=steps, needs_mask=plan["needs_mask"],
        penalty=penalty, inv_n=inv_n)

    def grad_index_map(pi, si):
        b = pi * steps + si
        # Clamp phantom blocks (odd block count split across TCs) onto the last
        # real block; their contribution is masked to zero in-kernel.
        return (jnp.minimum(b, num_blocks - 1), 0)

    grad_bytes = int(grad2d.size * grad2d.dtype.itemsize)
    score_elems = int(fake2d.size + real2d.size)

    out = pl.pallas_call(
        kernel,
        out_shape=jax.ShapeDtypeStruct((num_parallel, 8, 128), jnp.float32),
        grid=(num_parallel, steps),
        in_specs=[
            pl.BlockSpec(fake2d.shape, lambda pi, si: (0, 0)),   # resident
            pl.BlockSpec(real2d.shape, lambda pi, si: (0, 0)),   # resident
            pl.BlockSpec((block_rows, lanes), grad_index_map),
        ],
        out_specs=pl.BlockSpec((1, 8, 128), lambda pi, si: (pi, 0, 0)),
        scratch_shapes=[pltpu.VMEM((plan["chunk_rows"], lanes), jnp.float32)],
        compiler_params=pltpu.CompilerParams(
            dimension_semantics=("parallel", "arbitrary")),
        cost_estimate=pl.CostEstimate(
            flops=3 * rows * lanes + 8 * score_elems,
            transcendentals=2 * score_elems,
            bytes_accessed=grad_bytes + 4 * score_elems
                           + num_parallel * 8 * 128 * 4),
    )(fake2d, real2d, grad2d)

    # Sum per-parallel-slice partials (slice 0 also carries the softplus terms).
    loss = jnp.sum(out[:, 0, 0])
    if tail_sq is not None:
        loss = loss + (penalty * inv_n) * tail_sq
    return loss


def _reference(fake_predict, mode, real_scores=None, grad_real=None, penalty=5.0):
    """Pure-JAX reference mirroring the PyTorch module."""
    sp = jax.nn.softplus
    if mode == "discriminator":
        g = jnp.reshape(grad_real, (grad_real.shape[0], -1)).astype(jnp.float32)
        grad_pen = penalty * jnp.mean(jnp.sum(g * g, axis=1))
        return jnp.mean(sp(fake_predict)) + jnp.mean(sp(-real_scores)) + grad_pen
    return jnp.mean(sp(-fake_predict))


if __name__ == "__main__":
    key = jax.random.PRNGKey(0)
    k1, k2, k3, k4, k5, k6 = jax.random.split(key, 6)

    # Small shapes consistent with the module: batch=2, channels=4, 16x16 maps.
    N, C, H, W = 2, 4, 16, 16
    fake_predict = jax.random.normal(k1, (N, 1), dtype=jnp.float32)
    real_scores = jax.random.normal(k2, (N, 1), dtype=jnp.float32)
    grad_real = jax.random.normal(k3, (N, C, H, W), dtype=jnp.float32)

    d_loss = wgan_gp_r1(fake_predict, "discriminator", real_scores=real_scores,
                        grad_real=grad_real, penalty=5.0)
    d_loss = jax.block_until_ready(d_loss)
    d_ref = _reference(fake_predict, "discriminator", real_scores=real_scores,
                       grad_real=grad_real, penalty=5.0)
    assert jnp.allclose(d_loss, d_ref, rtol=1e-5, atol=1e-5), (d_loss, d_ref)

    g_loss = wgan_gp_r1(fake_predict, "generator")
    g_loss = jax.block_until_ready(g_loss)
    g_ref = _reference(fake_predict, "generator")
    assert jnp.allclose(g_loss, g_ref, rtol=1e-5, atol=1e-5), (g_loss, g_ref)

    # Larger gradient: exercises the multi-block / partial-block masked path
    # (2400 rows of 1024 lanes, not a multiple of the tile rows on any chip).
    grad_big = jax.random.normal(k4, (2, 4, 300, 1024), dtype=jnp.float32)
    fake_big = jax.random.normal(k5, (2, 1), dtype=jnp.float32)
    real_big = jax.random.normal(k6, (2, 1), dtype=jnp.float32)
    d2 = wgan_gp_r1(fake_big, "discriminator", real_scores=real_big,
                    grad_real=grad_big, penalty=5.0)
    d2 = jax.block_until_ready(d2)
    d2_ref = _reference(fake_big, "discriminator", real_scores=real_big,
                        grad_real=grad_big, penalty=5.0)
    assert jnp.allclose(d2, d2_ref, rtol=1e-4, atol=1e-3), (d2, d2_ref)

    # Ragged element count (not a multiple of 128): exercises the wrapper tail.
    grad_odd = jax.random.normal(k4, (2, 3, 11, 13), dtype=jnp.float32)
    d3 = wgan_gp_r1(fake_predict, "discriminator", real_scores=real_scores,
                    grad_real=grad_odd, penalty=5.0)
    d3 = jax.block_until_ready(d3)
    d3_ref = _reference(fake_predict, "discriminator", real_scores=real_scores,
                        grad_real=grad_odd, penalty=5.0)
    assert jnp.allclose(d3, d3_ref, rtol=1e-5, atol=1e-5), (d3, d3_ref)

    print("KERNEL_OK")
</pallas_src>

<mosaic_0001>
module attributes {stable_mosaic.version = 11 : i64} {
  func.func @_disc_kernel(%arg0: i32, %arg1: i32, %arg2: memref<1x2xf32, #tpu.memory_space<vmem>>, %arg3: memref<1x2xf32, #tpu.memory_space<vmem>>, %arg4: memref<2x1024xf32, #tpu.memory_space<vmem>>, %arg5: memref<1x8x128xf32, #tpu.memory_space<vmem>>, %arg6: memref<8x1024xf32, #tpu.memory_space<vmem>>) attributes {dimension_semantics = [#tpu.dimension_semantics<parallel>, #tpu.dimension_semantics<arbitrary>], iteration_bounds = array<i64: 1, 1>, scalar_prefetch = 0 : i64, scratch_operands = 1 : i64, tpu.core_type = #tpu.core_type<tc>, window_params = [{pipeline_mode = #tpu.pipeline_mode<synchronous>, transform_indices = @transform_0, window_bounds = array<i64: 1, 2>}, {pipeline_mode = #tpu.pipeline_mode<synchronous>, transform_indices = @transform_1, window_bounds = array<i64: 1, 2>}, {transform_indices = @transform_2, window_bounds = array<i64: 2, 1024>}, {transform_indices = @transform_3, window_bounds = array<i64: 1, 8, 128>}]} {
    %c0_i32 = arith.constant 0 : i32
    %0 = arith.cmpi eq, %arg1, %c0_i32 : i32
    %1 = arith.extui %0 : i1 to i32
    %c0_i32_0 = arith.constant 0 : i32
    %2 = arith.cmpi ne, %1, %c0_i32_0 : i32
    scf.if %2 {
      %cst = arith.constant 0.000000e+00 : f32
      %11 = vector.broadcast %cst : f32 to vector<8x1024xf32>
      %c0_8 = arith.constant 0 : index
      %c0_9 = arith.constant 0 : index
      %12 = vector.load %arg6[%c0_8, %c0_9] : memref<8x1024xf32, #tpu.memory_space<vmem>>, vector<8x1024xf32>
      tpu.vector_store %arg6[%c0_8, %c0_9], %11 {strides = array<i32>} : memref<8x1024xf32, #tpu.memory_space<vmem>>, vector<8x1024xf32>,
    } else {
    }
    %c0 = arith.constant 0 : index
    %c0_1 = arith.constant 0 : index
    %3 = vector.load %arg4[%c0, %c0_1] : memref<2x1024xf32, #tpu.memory_space<vmem>>, vector<2x1024xf32>
    %c0_2 = arith.constant 0 : index
    %c0_3 = arith.constant 0 : index
    %4 = vector.load %arg6[%c0_2, %c0_3] : memref<8x1024xf32, #tpu.memory_space<vmem>>, vector<2x1024xf32>
    %5 = arith.mulf %3, %3 : vector<2x1024xf32>
    %6 = arith.addf %4, %5 : vector<2x1024xf32>
    %c0_4 = arith.constant 0 : index
    %c0_5 = arith.constant 0 : index
    %7 = vector.load %arg6[%c0_4, %c0_5] : memref<8x1024xf32, #tpu.memory_space<vmem>>, vector<2x1024xf32>
    tpu.vector_store %arg6[%c0_4, %c0_5], %6 {strides = array<i32>} : memref<8x1024xf32, #tpu.memory_space<vmem>>, vector<2x1024xf32>,
    %c0_i32_6 = arith.constant 0 : i32
    %8 = arith.cmpi eq, %arg1, %c0_i32_6 : i32
    %9 = arith.extui %8 : i1 to i32
    %c0_i32_7 = arith.constant 0 : i32
    %10 = arith.cmpi ne, %9, %c0_i32_7 : i32
    scf.if %10 {
      %c0_8 = arith.constant 0 : index
      %c0_9 = arith.constant 0 : index
      %11 = vector.load %arg6[%c0_8, %c0_9] : memref<8x1024xf32, #tpu.memory_space<vmem>>, vector<8x1024xf32>
      %12 = vector.shape_cast %11 : vector<8x1024xf32> to vector<1x8x1024xf32>
      %cst = arith.constant dense<0.000000e+00> : vector<1xf32>
      %13 = vector.multi_reduction <add>, %12, %cst [1, 2] : vector<1x8x1024xf32> to vector<1xf32>
      %14 = vector.shape_cast %13 : vector<1xf32> to vector<1x1x1xf32>
      %15 = vector.extract %14[0, 0, 0] : f32 from vector<1x1x1xf32>
      %cst_10 = arith.constant 2.500000e+00 : f32
      %16 = arith.mulf %15, %cst_10 : f32
      %c0_i32_11 = arith.constant 0 : i32
      %17 = arith.cmpi eq, %arg0, %c0_i32_11 : i32
      %18 = arith.extui %17 : i1 to i32
      %c0_i32_12 = arith.constant 0 : i32
      %19 = arith.cmpi ne, %18, %c0_i32_12 : i32
      scf.if %19 {
        %c0_15 = arith.constant 0 : index
        %c0_16 = arith.constant 0 : index
        %23 = vector.load %arg2[%c0_15, %c0_16] : memref<1x2xf32, #tpu.memory_space<vmem>>, vector<1x2xf32>
        %c0_17 = arith.constant 0 : index
        %c0_18 = arith.constant 0 : index
        %24 = vector.load %arg3[%c0_17, %c0_18] : memref<1x2xf32, #tpu.memory_space<vmem>>, vector<1x2xf32>
        %cst_19 = arith.constant 0.000000e+00 : f32
        %25 = vector.broadcast %cst_19 : f32 to vector<1x2xf32>
        %26 = arith.maximumf %23, %25 : vector<1x2xf32>
        %27 = math.absf %23 : vector<1x2xf32>
        %cst_20 = arith.constant 0.000000e+00 : f32
        %28 = vector.broadcast %cst_20 : f32 to vector<1x2xf32>
        %29 = arith.subf %28, %27 : vector<1x2xf32>
        %30 = math.exp %29 : vector<1x2xf32>
        %31 = math.log1p %30 : vector<1x2xf32>
        %32 = arith.addf %26, %31 : vector<1x2xf32>
        %33 = vector.shape_cast %32 : vector<1x2xf32> to vector<1x1x2xf32>
        %cst_21 = arith.constant dense<0.000000e+00> : vector<1xf32>
        %34 = vector.multi_reduction <add>, %33, %cst_21 [1, 2] : vector<1x1x2xf32> to vector<1xf32>
        %35 = vector.shape_cast %34 : vector<1xf32> to vector<1x1x1xf32>
        %36 = vector.extract %35[0, 0, 0] : f32 from vector<1x1x1xf32>
        %cst_22 = arith.constant 2.000000e+00 : f32
        %37 = arith.divf %36, %cst_22 : f32
        %cst_23 = arith.constant 0.000000e+00 : f32
        %38 = vector.broadcast %cst_23 : f32 to vector<1x2xf32>
        %39 = arith.subf %38, %24 : vector<1x2xf32>
        %cst_24 = arith.constant 0.000000e+00 : f32
        %40 = vector.broadcast %cst_24 : f32 to vector<1x2xf32>
        %41 = arith.maximumf %39, %40 : vector<1x2xf32>
        %42 = math.absf %39 : vector<1x2xf32>
        %cst_25 = arith.constant 0.000000e+00 : f32
        %43 = vector.broadcast %cst_25 : f32 to vector<1x2xf32>
        %44 = arith.subf %43, %42 : vector<1x2xf32>
        %45 = math.exp %44 : vector<1x2xf32>
        %46 = math.log1p %45 : vector<1x2xf32>
        %47 = arith.addf %41, %46 : vector<1x2xf32>
        %48 = vector.shape_cast %47 : vector<1x2xf32> to vector<1x1x2xf32>
        %cst_26 = arith.constant dense<0.000000e+00> : vector<1xf32>
        %49 = vector.multi_reduction <add>, %48, %cst_26 [1, 2] : vector<1x1x2xf32> to vector<1xf32>
        %50 = vector.shape_cast %49 : vector<1xf32> to vector<1x1x1xf32>
        %51 = vector.extract %50[0, 0, 0] : f32 from vector<1x1x1xf32>
        %cst_27 = arith.constant 2.000000e+00 : f32
        %52 = arith.divf %51, %cst_27 : f32
        %53 = arith.addf %37, %52 : f32
        %54 = arith.addf %16, %53 : f32
        %55 = vector.broadcast %54 : f32 to vector<1x8x128xf32>
        %c0_28 = arith.constant 0 : index
        %c0_29 = arith.constant 0 : index
        %c0_30 = arith.constant 0 : index
        %56 = vector.load %arg5[%c0_28, %c0_29, %c0_30] : memref<1x8x128xf32, #tpu.memory_space<vmem>>, vector<1x8x128xf32>
        tpu.vector_store %arg5[%c0_28, %c0_29, %c0_30], %55 {strides = array<i32>} : memref<1x8x128xf32, #tpu.memory_space<vmem>>, vector<1x8x128xf32>,
      } else {
      }
      %c0_i32_13 = arith.constant 0 : i32
      %20 = arith.cmpi ne, %arg0, %c0_i32_13 : i32
      %21 = arith.extui %20 : i1 to i32
      %c0_i32_14 = arith.constant 0 : i32
      %22 = arith.cmpi ne, %21, %c0_i32_14 : i32
      scf.if %22 {
        %23 = vector.broadcast %16 : f32 to vector<1x8x128xf32>
        %c0_15 = arith.constant 0 : index
        %c0_16 = arith.constant 0 : index
        %c0_17 = arith.constant 0 : index
        %24 = vector.load %arg5[%c0_15, %c0_16, %c0_17] : memref<1x8x128xf32, #tpu.memory_space<vmem>>, vector<1x8x128xf32>
        tpu.vector_store %arg5[%c0_15, %c0_16, %c0_17], %23 {strides = array<i32>} : memref<1x8x128xf32, #tpu.memory_space<vmem>>, vector<1x8x128xf32>,
      } else {
      }
    } else {
    }
    return
  }
  func.func @transform_0(%arg0: i32, %arg1: i32) -> (i32, i32) {
    %c0_i32 = arith.constant 0 : i32
    %c0_i32_0 = arith.constant 0 : i32
    %c0_i32_1 = arith.constant 0 : i32
    return %c0_i32, %c0_i32_0 : i32, i32
  }
  func.func @transform_1(%arg0: i32, %arg1: i32) -> (i32, i32) {
    %c0_i32 = arith.constant 0 : i32
    %c0_i32_0 = arith.constant 0 : i32
    %c0_i32_1 = arith.constant 0 : i32
    return %c0_i32, %c0_i32_0 : i32, i32
  }
  func.func @transform_2(%arg0: i32, %arg1: i32) -> (i32, i32) {
    %c1_i32 = arith.constant 1 : i32
    %0 = arith.muli %arg0, %c1_i32 : i32
    %1 = arith.addi %0, %arg1 : i32
    %c0_i32 = arith.constant 0 : i32
    %2 = arith.minsi %1, %c0_i32 : i32
    %c0_i32_0 = arith.constant 0 : i32
    %c0_i32_1 = arith.constant 0 : i32
    return %2, %c0_i32_0 : i32, i32
  }
  func.func @transform_3(%arg0: i32, %arg1: i32) -> (i32, i32, i32) {
    %c0_i32 = arith.constant 0 : i32
    %c0_i32_0 = arith.constant 0 : i32
    %c0_i32_1 = arith.constant 0 : i32
    return %arg0, %c0_i32, %c0_i32_0 : i32, i32, i32
  }
}

</mosaic_0001>

<bundles_post_ra>
// kernel: tpu_custom_call.1
= control target key start
LH: loop header
LB: loop body
LE: loop exit
PB: predicated region body
PF: predicated region fallthrough
CT: control target
= control target key end

     0   :  { %8 = vsyncpa [#allocation4], 0  ;;  %s385_s0 = inlined_call_operand.hbm [shape: f32[1,2], index: 0, kind: input, shape index: {}]   ;;  %s386_s1 = inlined_call_operand.vmem [shape: f32[1,2], index: 1, kind: input, shape index: {}]   ;;  %s387_s2 = inlined_call_operand.hbm [shape: f32[2,1024], index: 2, kind: input, shape index: {}]   ;;  %s388_s3 = inlined_call_operand.hbm [shape: f32[1,8,128], index: 3, kind: output, shape index: {}]  }
   0x1   :  { %9 = vsyncpa [#allocation7], 0 }
   0x2   :  { %10 = vsyncpa [#allocation5], 0  ;;  %s337_s12 = smov [#allocation3]   ;;  %s338_s14 = smov [#allocation6]  }
   0x3   :  { %s17_s13 = sshll.u32 %s337_s12, 4  ;;  %s35_s15 = sshll.u32 %s338_s14, 4  ;;  %s18_s13 = int_to_ptr.vmem [resolvable:$true] %s17_s13  ;;  %s36_s15 = int_to_ptr.vmem [resolvable:$true] %s35_s15 }
   0x4   :  { %s279_s16 = scalar_lea.vmem %s18_s13, 16  ;;  %s283_s17 = scalar_lea.vmem %s18_s13, 32 }
   0x5   :  { %p280_p0 = scmp.ne.s32.totalorder %s18_s13, %s279_s16  ;;  %p284_p1 = scmp.lt.s32.totalorder %s18_s13, %s18_s13 }
   0x6   :  { %p285_p2 = scmp.lt.s32.totalorder %s283_s17, %s279_s16 }
   0x8   :  { %p286_p3 = por %p285_p2, %p284_p1 }
   0xa   :  { %p287_p4 = pnand %p286_p3, %p280_p0 }
   0xc   :  { %290 = shalt.err (!%p287_p4)
}
   0xd   :  { %20 = dma.hbm_to_vmem [thread:$0]  %s385_s0, 16, %s18_s13, [#allocation4]  }
   0xe   :  { %s299_s20 = scalar_lea.vmem %s36_s15, 256  ;;  %p304_p6 = scmp.lt.s32.totalorder %s36_s15, %s36_s15 }
   0xf   :  { %p300_p5 = scmp.ne.s32.totalorder %s36_s15, %s299_s20  ;;  %p305_p7 = scmp.lt.s32.totalorder %s299_s20, %s299_s20 }
  0x11   :  { %p306_p8 = por %p305_p7, %p304_p6 }
  0x13   :  { %p307_p9 = pnand %p306_p8, %p300_p5 }
  0x15   :  { %310 = shalt.err (!%p307_p9)
}
  0x16   :  { %38 = dma.hbm_to_vmem [thread:$0]  %s387_s2, 256, %s36_s15, [#allocation7]  }
  0x17   :  { %331 = dma.done.wait [#allocation4], 16  }
  0x18   :  { %332 = vsyncadd [#allocation4], 4294967280 }
  0x19   :  { %333 = dma.done.wait [#allocation7], 256  }
  0x1a   :  { %334 = vsyncadd [#allocation7], 4294967040  ;;  %v78_v0 = vlaneseq  ;;  %v339_v1 = vmov 0.0   ;;  %v340_v2 = vmov 1983009808   ;;  %v60_v7 = vld [vmem:[#allocation6] sm:$0xff] }
  0x1b   :  { %52 = vst [vmem:[#allocation2 + $0x30] sm:$0xff] %v339_v1  ;;  %53 = vst [vmem:[#allocation2] sm:$0xff] %v339_v1  ;;  %v76_v3 = vunpack.c.l.s4 %v340_v2  ;;  %v61_v8 = vld [vmem:[#allocation6 + $0x8] sm:$0xff]  ;;  %v70_v9 = vmul.f32 %v60_v7, %v60_v7  ;;  %v368_v11 = vld [vmem:[#allocation3] sm:$0x1]  ;;  %vm181_vm1 = vcmask 8192  }
  0x1c   :  { %54 = vst [vmem:[#allocation2 + $0x18] sm:$0xff] %v339_v1  ;;  %55 = vst [vmem:[#allocation2 + $0x10] sm:$0xff] %v339_v1  ;;  %v79_v4 = vshrl.u32 %v78_v0, 7  ;;  %v71_v10 = vmul.f32 %v61_v8, %v61_v8  ;;  %v373_v19 = vld [vmem:[%s386_s1] sm:$0x1]  ;;  %v166_v8 = vmax.f32 %v368_v11, 0.0 }
  0x1d   :  { %56 = vst [vmem:[#allocation2 + $0x8] sm:$0xff] %v339_v1  ;;  %57 = vst [vmem:[#allocation2 + $0x20] sm:$0xff] %v339_v1  ;;  %v77_v5 = vunpack.c.0.s8 %v76_v3  ;;  %v74_v15 = vcombine.high %v70_v9, %v70_v9  ;;  %v167_v21 = vand.u32 2147483647, %v368_v11  ;;  %v195_v22 = vsub.f32 0.0, %v373_v19  ;;  %s341_s27 = smov [#allocation8]  }
  0x1e   :  { %58 = vst [vmem:[#allocation2 + $0x28] sm:$0xff] %v339_v1  ;;  %59 = vst [vmem:[#allocation2 + $0x38] sm:$0xff] %v339_v1  ;;  %v91_v17 = vcombine.high %v71_v10, %v71_v10  ;;  %s240_s28 = sshll.u32 %s341_s27, 4  ;;  %s241_s28 = int_to_ptr.vmem [resolvable:$true] %s240_s28 }
  0x1f   :  { %v80_v6 = vsub.s32 %v77_v5, %v79_v4  ;;  %v168_v33 = vsub.f32 0.0, %v167_v21  ;;  %v197_v41 = vand.u32 2147483647, %v195_v22  ;;  %s311_s5 = scalar_lea.vmem %s241_s28, 128  ;;  %p316_p11 = scmp.lt.s32.totalorder %s241_s28, %s241_s28 }
  0x20   :  { %p312_p10 = scmp.ne.s32.totalorder %s241_s28, %s311_s5  ;;  %p317_p12 = scmp.lt.s32.totalorder %s311_s5, %s311_s5 }
  0x21   :  { %v81_v16 = vrot.slane %v70_v9, %v80_v6  ;;  %v98_v18 = vrot.slane %v71_v10, %v80_v6  ;;  %v88_v25 = vrot.slane %v74_v15, %v80_v6  ;;  %v105_v27 = vrot.slane %v91_v17, %v80_v6 }
  0x22   :  { %v62_v12 = vld [vmem:[#allocation2 + $0x30] sm:$0x3]  ;;  %v63_v13 = vld [vmem:[#allocation2] sm:$0x3]  ;;  %v169_v40 = vmul.f32 1.442695, %v168_v33  ;;  %p318_p13 = por %p317_p12, %p316_p11 }
  0x23   :  { %v64_v20 = vld [vmem:[#allocation2 + $0x18] sm:$0x3]  ;;  %v89_v26 = vcombine.high %v81_v16, %v81_v16  ;;  %v106_v28 = vcombine.high %v98_v18, %v98_v18  ;;  %v65_v29 = vld [vmem:[#allocation2 + $0x10] sm:$0x3]  ;;  %v116_v31 = vadd.f32 %v81_v16, %v62_v12  ;;  %v90_v34 = vcombine.high %v88_v25, %v88_v25 }
  0x24   :  { %v66_v14 = vld [vmem:[#allocation2 + $0x8] sm:$0x3]  ;;  %v67_v23 = vld [vmem:[#allocation2 + $0x20] sm:$0x3]  ;;  %v107_v35 = vcombine.high %v105_v27, %v105_v27  ;;  %v118_v37 = vadd.f32 %v88_v25, %v64_v20  ;;  %263 = vpow2.f32 %v169_v40  ;;  %v198_v44 = vsub.f32 0.0, %v197_v41  ;;  %p319_p0 = pnand %p318_p13, %p312_p10 }
  0x25   :  { %v68_v24 = vld [vmem:[#allocation2 + $0x28] sm:$0x3]  ;;  %v69_v30 = vld [vmem:[#allocation2 + $0x38] sm:$0x3]  ;;  %v120_v32 = vadd.f32 %v98_v18, %v66_v14  ;;  %v117_v36 = vadd.f32 %v89_v26, %v63_v13  ;;  %v121_v38 = vadd.f32 %v106_v28, %v67_v23  ;;  %124 = vst [vmem:[#allocation2 + $0x30] sm:$0x3] %v116_v31  ;;  %v119_v42 = vadd.f32 %v90_v34, %v65_v29 }
  0x26   :  { %v122_v39 = vadd.f32 %v105_v27, %v68_v24  ;;  %v123_v43 = vadd.f32 %v107_v35, %v69_v30  ;;  %126 = vst [vmem:[#allocation2 + $0x18] sm:$0x3] %v118_v37  ;;  %v199_v45 = vmul.f32 1.442695, %v198_v44  ;;  %v196_v16 = vmax.f32 %v195_v22, 0.0 }
  0x27   :  { %128 = vst [vmem:[#allocation2 + $0x8] sm:$0x3] %v120_v32  ;;  %125 = vst [vmem:[#allocation2] sm:$0x3] %v117_v36 }
  0x28   :  { %129 = vst [vmem:[#allocation2 + $0x20] sm:$0x3] %v121_v38  ;;  %130 = vst [vmem:[#allocation2 + $0x28] sm:$0x3] %v122_v39  ;;  %265 = vpow2.f32 %v199_v45 }
  0x29   :  { %127 = vst [vmem:[#allocation2 + $0x10] sm:$0x3] %v119_v42  ;;  %131 = vst [vmem:[#allocation2 + $0x38] sm:$0x3] %v123_v43 }
  0x2c   :  { %v135_v46 = vld [vmem:[#allocation2 + $0x30] sm:$0xff] }
  0x2d   :  { %v137_v48 = vld [vmem:[#allocation2 + $0x18] sm:$0xff] }
  0x2e   :  { %v136_v47 = vld [vmem:[#allocation2] sm:$0xff]  ;;  %v139_v52 = vld [vmem:[#allocation2 + $0x8] sm:$0xff] }
  0x2f   :  { %v143_v49 = vadd.f32 %v136_v47, %v135_v46  ;;  %v140_v54 = vld [vmem:[#allocation2 + $0x20] sm:$0xff]  ;;  %v141_v57 = vld [vmem:[#allocation2 + $0x28] sm:$0xff] }
  0x30   :  { %v138_v50 = vld [vmem:[#allocation2 + $0x10] sm:$0xff]  ;;  %v142_v60 = vld [vmem:[#allocation2 + $0x38] sm:$0xff] }
  0x31   :  { %v144_v51 = vadd.f32 %v143_v49, %v137_v48  ;;  %v264_v55 = vpop.eup %263 }
  0x32   :  { %v171_v58 = vadd.f32 1.0, %v264_v55  ;;  %v174_v1 = vmul.f32 -0.5, %v264_v55  ;;  %v177_v4 = vand.u32 2147483647, %v264_v55 }
  0x33   :  { %v145_v53 = vadd.f32 %v144_v51, %v138_v50 }
  0x34   :  { %267 = vlog2.f32 %v171_v58  ;;  %v175_v2 = vadd.f32 1.0, %v174_v1  ;;  %vm178_vm0 = vcmp.lt.f32.partialorder %v177_v4, 0.0004427343 }
  0x35   :  { %v146_v56 = vadd.f32 %v145_v53, %v139_v52  ;;  %v266_v61 = vpop.eup %265 }
  0x36   :  { %v201_v63 = vadd.f32 1.0, %v266_v61  ;;  %v204_v3 = vmul.f32 -0.5, %v266_v61  ;;  %v176_v5 = vmul.f32 %v264_v55, %v175_v2  ;;  %v207_v9 = vand.u32 2147483647, %v266_v61 }
  0x37   :  { %v147_v59 = vadd.f32 %v146_v56, %v140_v54 }
  0x38   :  { %269 = vlog2.f32 %v201_v63  ;;  %v205_v6 = vadd.f32 1.0, %v204_v3  ;;  %vm208_vm2 = vcmp.lt.f32.partialorder %v207_v9, 0.0004427343 }
  0x39   :  { %v148_v62 = vadd.f32 %v147_v59, %v141_v57 }
  0x3a   :  { %v206_v13 = vmul.f32 %v266_v61, %v205_v6 }
  0x3b   :  { %v149_v0 = vadd.f32 %v148_v62, %v142_v60 }
  0x3d   :  { %150 = vadd.xlane.f32.xlu0 %v149_v0 }
  0x41   :  { %v268_v7 = vpop.eup %267 }
  0x42   :  { %v173_v10 = vmul.f32 0.6931472, %v268_v7 }
  0x44   :  { %v179_v12 = vsel %vm178_vm0, %v176_v5, %v173_v10 }
  0x45   :  { %v270_v14 = vpop.eup %269  ;;  %v180_v15 = vadd.f32 %v179_v12, %v166_v8 }
  0x46   :  { %v203_v17 = vmul.f32 0.6931472, %v270_v14 }
  0x47   :  { %v182_v18 = vsel %vm181_vm1, %v180_v15, 0.0 }
  0x48   :  { %183 = vadd.xlane.f32.xlu0 %v182_v18  ;;  %v209_v20 = vsel %vm208_vm2, %v206_v13, %v203_v17 }
  0x49   :  { %v210_v21 = vadd.f32 %v209_v20, %v196_v16 }
  0x4b   :  { %v211_v23 = vsel %vm181_vm1, %v210_v21, 0.0 }
  0x4c   :  { %212 = vadd.xlane.f32.xlu1 %v211_v23 }
  0xc6   :  { %v151_v11 = vpop.xlane.xlu0 %150 }
  0xc7   :  { %v152_v24 = vrot.slane %v151_v11, 4 }
  0xc9   :  { %v153_v25 = vadd.f32 %v152_v24, %v151_v11 }
  0xcb   :  { %v154_v26 = vrot.slane %v153_v25, 2 }
  0xcd   :  { %v155_v27 = vadd.f32 %v154_v26, %v153_v25 }
  0xcf   :  { %v156_v28 = vrot.slane %v155_v27, 1 }
  0xd1   :  { %v157_v29 = vadd.f32 %v156_v28, %v155_v27  ;;  %v184_v30 = vpop.xlane.xlu0 %183 }
  0xd2   :  { %v185_v31 = vrot.slane %v184_v30, 4 }
  0xd3   :  { %252 = vpush %v157_v29 }
  0xd4   :  { %v186_v19 = vadd.f32 %v185_v31, %v184_v30 }
  0xd5   :  { %v213_v22 = vpop.xlane.xlu1 %212 }
  0xd6   :  { %v187_v32 = vrot.slane %v186_v19, 2  ;;  %v214_v33 = vrot.slane %v213_v22, 4 }
  0xd8   :  { %v188_v34 = vadd.f32 %v187_v32, %v186_v19  ;;  %v215_v35 = vadd.f32 %v214_v33, %v213_v22 }
  0xda   :  { %v216_v36 = vrot.slane %v215_v35, 2  ;;  %v189_v37 = vrot.slane %v188_v34, 1 }
  0xdc   :  { %v217_v38 = vadd.f32 %v216_v36, %v215_v35  ;;  %v190_v39 = vadd.f32 %v189_v37, %v188_v34 }
  0xde   :  { %254 = vpush %v190_v39  ;;  %v218_v40 = vrot.slane %v217_v38, 1 }
  0xe0   :  { %v219_v41 = vadd.f32 %v218_v40, %v217_v38 }
  0xe2   :  { %256 = vpush %v219_v41 }
 0x104   :  { %s253_s1 = spop %252 }
 0x105   :  { %s159_s29 = smul.f32 2.5, %s253_s1 }
 0x10f   :  { %s255_s23 = spop %254 }
 0x110   :  { %s194_s24 = smul.f32 0.5, %s255_s23 }
 0x113   :  { %s257_s25 = spop %256 }
 0x114   :  { %s223_s26 = smul.f32 0.5, %s257_s25 }
 0x116   :  { %s224_s30 = sadd.f32 %s223_s26, %s194_s24 }
 0x118   :  { %s225_s4 = sadd.f32 %s224_s30, %s159_s29 }
 0x11a   :  { %v226_v42 = vstv %s225_s4 }
 0x11b   :  { %227 = vst [vmem:[#allocation8] sm:$0xff] %v226_v42 }
 0x11c   :  { %322 = shalt.err (!%p319_p0)
}
 0x11d   :  { %243 = dma.vmem_to_hbm [thread:$0]  %s241_s28, 128, %s388_s3, [#allocation5]  }
 0x11e   :  { %335 = dma.done.wait [#allocation5], 128  }
 0x11f   :  { %336 = vsyncadd [#allocation5], 4294967168 }
 0x120   :  { %247 = vsyncpa [#allocation4], 1 }
 0x121   :  { %248 = vsyncpa [#allocation7], 1 }
 0x122   :  { %249 = vsyncpa [#allocation5], 1 }

</bundles_post_ra>
